<compile_context>
chip_gen: v7x
topology: tpu7x:2x2x1
jax: 0.10.0
libtpu: 0.0.40
codegen_flags: <defaults>
</compile_context>

<pallas_src>
import jax
import jax.numpy as jnp
from jax.experimental import pallas as pl
from jax.experimental.pallas import tpu as pltpu

MAX_ACTION = 0.397
BN_EPS = 1e-5


def _round_up(n, m):
    return ((n + m - 1) // m) * m


# ----------------------------------------------------------------------------
# Kernel: 4 matmuls (bf16 in, f32 acc) + f32 epilogue.
# ----------------------------------------------------------------------------
def bc_kernel(x_ref,
              w1_ref, b1_ref,
              w2_ref, b2_ref,
              w3_ref, b3_ref,
              w4_ref, b4_ref,
              o_ref):
    x = x_ref[...]  # bf16 [TB, 128]

    h = jnp.dot(x, w1_ref[...], preferred_element_type=jnp.float32) + b1_ref[...]
    h = jnp.maximum(h, 0.0)

    h = jnp.dot(h.astype(jnp.bfloat16), w2_ref[...],
                preferred_element_type=jnp.float32) + b2_ref[...]
    h = jnp.maximum(h, 0.0)

    h = jnp.dot(h.astype(jnp.bfloat16), w3_ref[...],
                preferred_element_type=jnp.float32) + b3_ref[...]
    h = jnp.maximum(h, 0.0)

    h = jnp.dot(h.astype(jnp.bfloat16), w4_ref[...],
                preferred_element_type=jnp.float32) + b4_ref[...]
    o_ref[...] = MAX_ACTION * jnp.tanh(h)


# ----------------------------------------------------------------------------
# Host-side parameter prep: BN fold (in f32), padding, bf16 cast.
# ----------------------------------------------------------------------------
def prepare_params(params_raw):
    (w1, b1, g1, be1, m1, v1,
     w2, b2, g2, be2, m2, v2,
     w3, b3, g3, be3, m3, v3,
     w4, b4) = params_raw

    def fold(w, b, g, be, m, v):
        scale = g * jax.lax.rsqrt(v + BN_EPS)          # (1, dout), f32
        return w * scale, (b - m) * scale + be

    w1f, b1f = fold(w1, b1, g1, be1, m1, v1)
    w2f, b2f = fold(w2, b2, g2, be2, m2, v2)
    w3f, b3f = fold(w3, b3, g3, be3, m3, v3)
    w4f, b4f = w4, b4

    # Pad obs_dim -> multiple of 128 (rows of W1), action_dim -> multiple of 128
    # (cols of W4 / b4).  Zero padding keeps the math exact; tanh(0)*max_action=0
    # in the padded output lanes which are sliced away.
    obs, h1 = w1f.shape
    obs_p = _round_up(obs, 128)
    w1p = jnp.zeros((obs_p, h1), jnp.float32).at[:obs, :].set(w1f)

    h3, act = w4f.shape
    act_p = _round_up(act, 128)
    w4p = jnp.zeros((h3, act_p), jnp.float32).at[:, :act].set(w4f)
    b4p = jnp.zeros((1, act_p), jnp.float32).at[:, :act].set(b4f)

    bf = lambda a: a.astype(jnp.bfloat16)
    # Weights -> bf16 (halves HBM traffic, bf16 MXU); biases stay f32 (epilogue).
    return (bf(w1p), b1f, bf(w2f), b2f, bf(w3f), b3f, bf(w4p), b4p)


# ----------------------------------------------------------------------------
# Wrapper: pad x / batch, tiled pallas_call, slice result.
# ----------------------------------------------------------------------------
def bc_forward(x, prepped, action_dim=9):
    w1, b1, w2, b2, w3, b3, w4, b4 = prepped
    B, obs = x.shape
    obs_p = w1.shape[0]
    act_p = w4.shape[1]

    # Batch tile: multiple of 8 sublanes; cap at 256 (fills v6e/v7x MXU rows).
    TB = 256 if B >= 256 else _round_up(B, 8)
    Bp = _round_up(B, TB)

    xp = jnp.zeros((Bp, obs_p), jnp.bfloat16)
    xp = xp.at[:B, :obs].set(x.astype(jnp.bfloat16))

    x_map = lambda i: (i, 0)
    w_map = lambda i: (0, 0)   # weights resident in VMEM, DMA'd once

    out = pl.pallas_call(
        bc_kernel,
        out_shape=jax.ShapeDtypeStruct((Bp, act_p), jnp.float32),
        grid=(Bp // TB,),
        in_specs=[
            pl.BlockSpec((TB, obs_p), x_map),
            pl.BlockSpec(w1.shape, w_map), pl.BlockSpec(b1.shape, w_map),
            pl.BlockSpec(w2.shape, w_map), pl.BlockSpec(b2.shape, w_map),
            pl.BlockSpec(w3.shape, w_map), pl.BlockSpec(b3.shape, w_map),
            pl.BlockSpec(w4.shape, w_map), pl.BlockSpec(b4.shape, w_map),
        ],
        out_specs=pl.BlockSpec((TB, act_p), x_map),
        compiler_params=pltpu.CompilerParams(
            dimension_semantics=("parallel",)),
    )(xp, w1, b1, w2, b2, w3, b3, w4, b4)

    return out[:B, :action_dim]


# ----------------------------------------------------------------------------
# Synthetic parameters matching the PyTorch module shapes.
# ----------------------------------------------------------------------------
def init_params(key, obs_dim=97, action_dim=9):
    dims = [(obs_dim, 256), (256, 256), (256, 128), (128, action_dim)]
    params = []
    for li, (din, dout) in enumerate(dims):
        kw, kb, kg, kbe, km, kv = jax.random.split(jax.random.fold_in(key, li), 6)
        bound = 1.0 / jnp.sqrt(din)
        w = jax.random.uniform(kw, (din, dout), jnp.float32, -bound, bound)
        b = jax.random.uniform(kb, (1, dout), jnp.float32, -bound, bound)
        params += [w, b]
        if li < 3:  # the last Linear has no BatchNorm after it
            gamma = 1.0 + 0.1 * jax.random.normal(kg, (1, dout), jnp.float32)
            beta = 0.1 * jax.random.normal(kbe, (1, dout), jnp.float32)
            mean = 0.1 * jax.random.normal(km, (1, dout), jnp.float32)
            var = jax.random.uniform(kv, (1, dout), jnp.float32, 0.5, 1.5)
            params += [gamma, beta, mean, var]
    return params


# Full-precision (un-folded) reference: BC.forward in eval() mode.
def bc_reference_f32(x, params_raw):
    (w1, b1, g1, be1, m1, v1,
     w2, b2, g2, be2, m2, v2,
     w3, b3, g3, be3, m3, v3,
     w4, b4) = params_raw

    def bn(h, g, be, m, v):
        return (h - m) * (g * jax.lax.rsqrt(v + BN_EPS)) + be

    h = jnp.maximum(bn(x @ w1 + b1, g1, be1, m1, v1), 0.0)
    h = jnp.maximum(bn(h @ w2 + b2, g2, be2, m2, v2), 0.0)
    h = jnp.maximum(bn(h @ w3 + b3, g3, be3, m3, v3), 0.0)
    return MAX_ACTION * jnp.tanh(h @ w4 + b4)


# Reference that mirrors the kernel's exact numerics (folded BN, bf16 matmul
# inputs, f32 accumulation) -- for a tight correctness check.
def bc_reference_matched(x, prepped, action_dim=9):
    w1, b1, w2, b2, w3, b3, w4, b4 = prepped
    obs_p = w1.shape[0]
    xb = jnp.zeros((x.shape[0], obs_p), jnp.bfloat16)
    xb = xb.at[:, :x.shape[1]].set(x.astype(jnp.bfloat16))
    h = jnp.maximum(jnp.dot(xb, w1, preferred_element_type=jnp.float32) + b1, 0.0)
    h = jnp.maximum(jnp.dot(h.astype(jnp.bfloat16), w2,
                            preferred_element_type=jnp.float32) + b2, 0.0)
    h = jnp.maximum(jnp.dot(h.astype(jnp.bfloat16), w3,
                            preferred_element_type=jnp.float32) + b3, 0.0)
    h = jnp.dot(h.astype(jnp.bfloat16), w4,
                preferred_element_type=jnp.float32) + b4
    return (MAX_ACTION * jnp.tanh(h))[:, :action_dim]


if __name__ == "__main__":
    key = jax.random.PRNGKey(0)
    kx, kp, kx2 = jax.random.split(key, 3)

    B, OBS, ACT = 8, 97, 9
    x = jax.random.normal(kx, (B, OBS), jnp.float32)
    params_raw = init_params(kp, OBS, ACT)
    prepped = prepare_params(params_raw)

    out = jax.block_until_ready(bc_forward(x, prepped, ACT))
    assert out.shape == (B, ACT), out.shape

    # Tight check vs. a pure-JAX replica of the kernel's numerics.
    ref_match = bc_reference_matched(x, prepped, ACT)
    assert jnp.allclose(out, ref_match, atol=1e-4, rtol=1e-4), \
        float(jnp.abs(out - ref_match).max())

    # Loose check vs. the full-f32, un-folded BC forward (bf16 rounding only).
    ref_f32 = bc_reference_f32(x, params_raw)
    assert jnp.allclose(out, ref_f32, atol=3e-2, rtol=3e-2), \
        float(jnp.abs(out - ref_f32).max())

    # Exercise the multi-tile batch path (grid > 1, batch padding).
    B2 = 300
    x2 = jax.random.normal(kx2, (B2, OBS), jnp.float32)
    out2 = jax.block_until_ready(bc_forward(x2, prepped, ACT))
    assert out2.shape == (B2, ACT), out2.shape
    ref2 = bc_reference_matched(x2, prepped, ACT)
    assert jnp.allclose(out2, ref2, atol=1e-4, rtol=1e-4), \
        float(jnp.abs(out2 - ref2).max())

    print("KERNEL_OK")
</pallas_src>

<mosaic_0001>
module attributes {stable_mosaic.version = 11 : i64} {
  func.func @bc_kernel(%arg0: i32, %arg1: memref<8x128xbf16, #tpu.memory_space<vmem>>, %arg2: memref<128x256xbf16, #tpu.memory_space<vmem>>, %arg3: memref<1x256xf32, #tpu.memory_space<vmem>>, %arg4: memref<256x256xbf16, #tpu.memory_space<vmem>>, %arg5: memref<1x256xf32, #tpu.memory_space<vmem>>, %arg6: memref<256x128xbf16, #tpu.memory_space<vmem>>, %arg7: memref<1x128xf32, #tpu.memory_space<vmem>>, %arg8: memref<128x128xbf16, #tpu.memory_space<vmem>>, %arg9: memref<1x128xf32, #tpu.memory_space<vmem>>, %arg10: memref<8x128xf32, #tpu.memory_space<vmem>>) attributes {dimension_semantics = [#tpu.dimension_semantics<parallel>], iteration_bounds = array<i64: 1>, scalar_prefetch = 0 : i64, scratch_operands = 0 : i64, tpu.core_type = #tpu.core_type<tc>, window_params = [{transform_indices = @transform_0, window_bounds = array<i64: 8, 128>}, {pipeline_mode = #tpu.pipeline_mode<synchronous>, transform_indices = @transform_1, window_bounds = array<i64: 128, 256>}, {pipeline_mode = #tpu.pipeline_mode<synchronous>, transform_indices = @transform_2, window_bounds = array<i64: 1, 256>}, {pipeline_mode = #tpu.pipeline_mode<synchronous>, transform_indices = @transform_3, window_bounds = array<i64: 256, 256>}, {pipeline_mode = #tpu.pipeline_mode<synchronous>, transform_indices = @transform_4, window_bounds = array<i64: 1, 256>}, {pipeline_mode = #tpu.pipeline_mode<synchronous>, transform_indices = @transform_5, window_bounds = array<i64: 256, 128>}, {pipeline_mode = #tpu.pipeline_mode<synchronous>, transform_indices = @transform_6, window_bounds = array<i64: 1, 128>}, {pipeline_mode = #tpu.pipeline_mode<synchronous>, transform_indices = @transform_7, window_bounds = array<i64: 128, 128>}, {pipeline_mode = #tpu.pipeline_mode<synchronous>, transform_indices = @transform_8, window_bounds = array<i64: 1, 128>}, {transform_indices = @transform_9, window_bounds = array<i64: 8, 128>}]} {
    %c0 = arith.constant 0 : index
    %c0_0 = arith.constant 0 : index
    %0 = vector.load %arg1[%c0, %c0_0] : memref<8x128xbf16, #tpu.memory_space<vmem>>, vector<8x128xbf16>
    %c0_1 = arith.constant 0 : index
    %c0_2 = arith.constant 0 : index
    %1 = vector.load %arg2[%c0_1, %c0_2] : memref<128x256xbf16, #tpu.memory_space<vmem>>, vector<128x256xbf16>
    %cst = arith.constant dense<0.000000e+00> : vector<8x256xf32>
    %2 = tpu.matmul %0, %1, %cst {dimension_numbers = #tpu.dot_dimension_numbers<[1], [0], [0], [1], [0, 0, 1, 1], [], []>} : vector<8x128xbf16>, vector<128x256xbf16>, vector<8x256xf32> -> vector<8x256xf32>
    %c0_3 = arith.constant 0 : index
    %c0_4 = arith.constant 0 : index
    %3 = vector.load %arg3[%c0_3, %c0_4] : memref<1x256xf32, #tpu.memory_space<vmem>>, vector<1x256xf32>
    %4 = vector.broadcast %3 : vector<1x256xf32> to vector<8x256xf32>
    %5 = arith.addf %2, %4 : vector<8x256xf32>
    %cst_5 = arith.constant 0.000000e+00 : f32
    %6 = vector.broadcast %cst_5 : f32 to vector<8x256xf32>
    %7 = arith.maximumf %5, %6 : vector<8x256xf32>
    %8 = arith.truncf %7 : vector<8x256xf32> to vector<8x256xbf16>
    %c0_6 = arith.constant 0 : index
    %c0_7 = arith.constant 0 : index
    %9 = vector.load %arg4[%c0_6, %c0_7] : memref<256x256xbf16, #tpu.memory_space<vmem>>, vector<256x256xbf16>
    %cst_8 = arith.constant dense<0.000000e+00> : vector<8x256xf32>
    %10 = tpu.matmul %8, %9, %cst_8 {dimension_numbers = #tpu.dot_dimension_numbers<[1], [0], [0], [1], [0, 0, 1, 1], [], []>} : vector<8x256xbf16>, vector<256x256xbf16>, vector<8x256xf32> -> vector<8x256xf32>
    %c0_9 = arith.constant 0 : index
    %c0_10 = arith.constant 0 : index
    %11 = vector.load %arg5[%c0_9, %c0_10] : memref<1x256xf32, #tpu.memory_space<vmem>>, vector<1x256xf32>
    %12 = vector.broadcast %11 : vector<1x256xf32> to vector<8x256xf32>
    %13 = arith.addf %10, %12 : vector<8x256xf32>
    %cst_11 = arith.constant 0.000000e+00 : f32
    %14 = vector.broadcast %cst_11 : f32 to vector<8x256xf32>
    %15 = arith.maximumf %13, %14 : vector<8x256xf32>
    %16 = arith.truncf %15 : vector<8x256xf32> to vector<8x256xbf16>
    %c0_12 = arith.constant 0 : index
    %c0_13 = arith.constant 0 : index
    %17 = vector.load %arg6[%c0_12, %c0_13] : memref<256x128xbf16, #tpu.memory_space<vmem>>, vector<256x128xbf16>
    %cst_14 = arith.constant dense<0.000000e+00> : vector<8x128xf32>
    %18 = tpu.matmul %16, %17, %cst_14 {dimension_numbers = #tpu.dot_dimension_numbers<[1], [0], [0], [1], [0, 0, 1, 1], [], []>} : vector<8x256xbf16>, vector<256x128xbf16>, vector<8x128xf32> -> vector<8x128xf32>
    %c0_15 = arith.constant 0 : index
    %c0_16 = arith.constant 0 : index
    %19 = vector.load %arg7[%c0_15, %c0_16] : memref<1x128xf32, #tpu.memory_space<vmem>>, vector<1x128xf32>
    %20 = vector.broadcast %19 : vector<1x128xf32> to vector<8x128xf32>
    %21 = arith.addf %18, %20 : vector<8x128xf32>
    %cst_17 = arith.constant 0.000000e+00 : f32
    %22 = vector.broadcast %cst_17 : f32 to vector<8x128xf32>
    %23 = arith.maximumf %21, %22 : vector<8x128xf32>
    %24 = arith.truncf %23 : vector<8x128xf32> to vector<8x128xbf16>
    %c0_18 = arith.constant 0 : index
    %c0_19 = arith.constant 0 : index
    %25 = vector.load %arg8[%c0_18, %c0_19] : memref<128x128xbf16, #tpu.memory_space<vmem>>, vector<128x128xbf16>
    %cst_20 = arith.constant dense<0.000000e+00> : vector<8x128xf32>
    %26 = tpu.matmul %24, %25, %cst_20 {dimension_numbers = #tpu.dot_dimension_numbers<[1], [0], [0], [1], [0, 0, 1, 1], [], []>} : vector<8x128xbf16>, vector<128x128xbf16>, vector<8x128xf32> -> vector<8x128xf32>
    %c0_21 = arith.constant 0 : index
    %c0_22 = arith.constant 0 : index
    %27 = vector.load %arg9[%c0_21, %c0_22] : memref<1x128xf32, #tpu.memory_space<vmem>>, vector<1x128xf32>
    %28 = vector.broadcast %27 : vector<1x128xf32> to vector<8x128xf32>
    %29 = arith.addf %26, %28 : vector<8x128xf32>
    %30 = math.tanh %29 : vector<8x128xf32>
    %cst_23 = arith.constant 3.970000e-01 : f32
    %31 = vector.broadcast %cst_23 : f32 to vector<8x128xf32>
    %32 = arith.mulf %31, %30 : vector<8x128xf32>
    %c0_24 = arith.constant 0 : index
    %c0_25 = arith.constant 0 : index
    %33 = vector.load %arg10[%c0_24, %c0_25] : memref<8x128xf32, #tpu.memory_space<vmem>>, vector<8x128xf32>
    tpu.vector_store %arg10[%c0_24, %c0_25], %32 {strides = array<i32>} : memref<8x128xf32, #tpu.memory_space<vmem>>, vector<8x128xf32>,
    return
  }
  func.func @transform_0(%arg0: i32) -> (i32, i32) {
    %c0_i32 = arith.constant 0 : i32
    %c0_i32_0 = arith.constant 0 : i32
    return %arg0, %c0_i32 : i32, i32
  }
  func.func @transform_1(%arg0: i32) -> (i32, i32) {
    %c0_i32 = arith.constant 0 : i32
    %c0_i32_0 = arith.constant 0 : i32
    %c0_i32_1 = arith.constant 0 : i32
    return %c0_i32, %c0_i32_0 : i32, i32
  }
  func.func @transform_2(%arg0: i32) -> (i32, i32) {
    %c0_i32 = arith.constant 0 : i32
    %c0_i32_0 = arith.constant 0 : i32
    %c0_i32_1 = arith.constant 0 : i32
    return %c0_i32, %c0_i32_0 : i32, i32
  }
  func.func @transform_3(%arg0: i32) -> (i32, i32) {
    %c0_i32 = arith.constant 0 : i32
    %c0_i32_0 = arith.constant 0 : i32
    %c0_i32_1 = arith.constant 0 : i32
    return %c0_i32, %c0_i32_0 : i32, i32
  }
  func.func @transform_4(%arg0: i32) -> (i32, i32) {
    %c0_i32 = arith.constant 0 : i32
    %c0_i32_0 = arith.constant 0 : i32
    %c0_i32_1 = arith.constant 0 : i32
    return %c0_i32, %c0_i32_0 : i32, i32
  }
  func.func @transform_5(%arg0: i32) -> (i32, i32) {
    %c0_i32 = arith.constant 0 : i32
    %c0_i32_0 = arith.constant 0 : i32
    %c0_i32_1 = arith.constant 0 : i32
    return %c0_i32, %c0_i32_0 : i32, i32
  }
  func.func @transform_6(%arg0: i32) -> (i32, i32) {
    %c0_i32 = arith.constant 0 : i32
    %c0_i32_0 = arith.constant 0 : i32
    %c0_i32_1 = arith.constant 0 : i32
    return %c0_i32, %c0_i32_0 : i32, i32
  }
  func.func @transform_7(%arg0: i32) -> (i32, i32) {
    %c0_i32 = arith.constant 0 : i32
    %c0_i32_0 = arith.constant 0 : i32
    %c0_i32_1 = arith.constant 0 : i32
    return %c0_i32, %c0_i32_0 : i32, i32
  }
  func.func @transform_8(%arg0: i32) -> (i32, i32) {
    %c0_i32 = arith.constant 0 : i32
    %c0_i32_0 = arith.constant 0 : i32
    %c0_i32_1 = arith.constant 0 : i32
    return %c0_i32, %c0_i32_0 : i32, i32
  }
  func.func @transform_9(%arg0: i32) -> (i32, i32) {
    %c0_i32 = arith.constant 0 : i32
    %c0_i32_0 = arith.constant 0 : i32
    return %arg0, %c0_i32 : i32, i32
  }
}

</mosaic_0001>

<bundles_post_ra>
// kernel: tpu_custom_call.1
= control target key start
LH: loop header
LB: loop body
LE: loop exit
PB: predicated region body
PF: predicated region fallthrough
CT: control target
= control target key end

     0   :  { %14 = vsyncpa [#allocation3], 0  ;;  %s1353_s0 = inlined_call_operand.hbm [shape: bf16[8,128], index: 0, kind: input, shape index: {}]   ;;  %s1354_s1 = inlined_call_operand.hbm [shape: bf16[128,256], index: 1, kind: input, shape index: {}]   ;;  %s1355_s2 = inlined_call_operand.vmem [shape: f32[1,256], index: 2, kind: input, shape index: {}]   ;;  %s1356_s3 = inlined_call_operand.hbm [shape: bf16[256,256], index: 3, kind: input, shape index: {}]   ;;  %s1357_s4 = inlined_call_operand.vmem [shape: f32[1,256], index: 4, kind: input, shape index: {}]   ;;  %s1358_s5 = inlined_call_operand.hbm [shape: bf16[256,128], index: 5, kind: input, shape index: {}]   ;;  %s1359_s6 = inlined_call_operand.vmem [shape: f32[1,128], index: 6, kind: input, shape index: {}]   ;;  %s1360_s7 = inlined_call_operand.hbm [shape: bf16[128,128], index: 7, kind: input, shape index: {}]   ;;  %s1361_s8 = inlined_call_operand.vmem [shape: f32[1,128], index: 8, kind: input, shape index: {}]   ;;  %s1362_s9 = inlined_call_operand.hbm [shape: f32[8,128], index: 9, kind: output, shape index: {}]  }
   0x1   :  { %15 = vsyncpa [#allocation6], 0 }
   0x2   :  { %16 = vsyncpa [#allocation9], 0 }
   0x3   :  { %17 = vsyncpa [#allocation4], 0  ;;  %s1187_s30 = smov [#allocation5]   ;;  %s1047_s13 = scalar_lea.hbm %s1354_s1, 2048 }
   0x4   :  { %s33_s10 = sshll.u32 %s1187_s30, 4  ;;  %p1048_p0 = scmp.ne.s32.totalorder %s1354_s1, %s1047_s13  ;;  %s34_s10 = int_to_ptr.vmem [resolvable:$true] %s33_s10 }
   0x5   :  { %p1051_p1 = scmp.lt.u32.totalorder %s1047_s13, %s1354_s1 }
   0x7   :  { %p1053_p2 = pnand %p1051_p1, %p1048_p0 }
   0x9   :  { %1056 = shalt.err (!%p1053_p2)
}
   0xa   :  { %s1057_s18 = scalar_lea.vmem %s34_s10, 2048  ;;  %p1062_p4 = scmp.lt.s32.totalorder %s34_s10, %s34_s10 }
   0xb   :  { %p1058_p3 = scmp.ne.s32.totalorder %s34_s10, %s1057_s18  ;;  %p1063_p5 = scmp.lt.s32.totalorder %s1057_s18, %s1057_s18 }
   0xd   :  { %p1064_p6 = por %p1063_p5, %p1062_p4 }
   0xf   :  { %p1065_p7 = pnand %p1064_p6, %p1058_p3 }
  0x11   :  { %1068 = shalt.err (!%p1065_p7)
}
  0x12   :  { %s1188_s19 = smov 128   ;;  %s1189_s20 = smov 8  }
  0x13   :  { %39 = dma.hbm_to_vmem [thread:$0]  %s1354_s1, 2048, %s34_s10, [#allocation6], %s1188_s19, %s1188_s19, %s1189_s20  }
  0x14   :  { %s1190_s23 = smov [#allocation8]   ;;  %s1069_s27 = scalar_lea.hbm %s1358_s5, 2048 }
  0x15   :  { %s61_s24 = sshll.u32 %s1190_s23, 4  ;;  %p1070_p8 = scmp.ne.s32.totalorder %s1358_s5, %s1069_s27  ;;  %s62_s24 = int_to_ptr.vmem [resolvable:$true] %s61_s24 }
  0x16   :  { %p1073_p9 = scmp.lt.u32.totalorder %s1069_s27, %s1358_s5 }
  0x18   :  { %p1075_p10 = pnand %p1073_p9, %p1070_p8 }
  0x1a   :  { %1078 = shalt.err (!%p1075_p10)
}
  0x1b   :  { %s1079_s12 = scalar_lea.vmem %s62_s24, 2048  ;;  %p1084_p12 = scmp.lt.s32.totalorder %s62_s24, %s62_s24 }
  0x1c   :  { %p1080_p11 = scmp.ne.s32.totalorder %s62_s24, %s1079_s12  ;;  %p1085_p13 = scmp.lt.s32.totalorder %s1079_s12, %s1079_s12 }
  0x1e   :  { %p1086_p0 = por %p1085_p13, %p1084_p12 }
  0x20   :  { %p1087_p1 = pnand %p1086_p0, %p1080_p11 }
  0x22   :  { %1090 = shalt.err (!%p1087_p1)
}
  0x23   :  { %s1191_s1 = smov 64   ;;  %s1192_s10 = smov 4  }
  0x24   :  { %67 = dma.hbm_to_vmem [thread:$0]  %s1358_s5, 2048, %s62_s24, [#allocation9], %s1191_s1, %s1191_s1, %s1192_s10  }
  0x25   :  { %s1193_s15 = smov [#allocation2]   ;;  %s1194_s17 = smov [#allocation7]  }
  0x26   :  { %s24_s16 = sshll.u32 %s1193_s15, 4  ;;  %s47_s18 = sshll.u32 %s1194_s17, 4  ;;  %s25_s16 = int_to_ptr.vmem [resolvable:$true] %s24_s16  ;;  %s1280_s18 = int_to_ptr.vmem [resolvable:$true] %s47_s18 }
  0x27   :  { %s1091_s23 = scalar_lea.hbm %s1353_s0, 64 }
  0x28   :  { %p1092_p2 = scmp.ne.s32.totalorder %s1353_s0, %s1091_s23  ;;  %p1095_p3 = scmp.lt.u32.totalorder %s1091_s23, %s1353_s0 }
  0x2a   :  { %p1097_p4 = pnand %p1095_p3, %p1092_p2 }
  0x2c   :  { %1100 = shalt.err (!%p1097_p4)
}
  0x2d   :  { %s1101_s5 = scalar_lea.vmem %s25_s16, 64  ;;  %p1106_p6 = scmp.lt.s32.totalorder %s25_s16, %s25_s16 }
  0x2e   :  { %p1102_p5 = scmp.ne.s32.totalorder %s25_s16, %s1101_s5  ;;  %p1107_p7 = scmp.lt.s32.totalorder %s1101_s5, %s1101_s5 }
  0x30   :  { %p1108_p8 = por %p1107_p7, %p1106_p6 }
  0x32   :  { %p1109_p9 = pnand %p1108_p8, %p1102_p5 }
  0x34   :  { %1112 = shalt.err (!%p1109_p9)
}
  0x35   :  { %27 = dma.hbm_to_vmem [thread:$0]  %s1353_s0, 64, %s25_s16, [#allocation3]  }
  0x36   :  { %s1113_s12 = scalar_lea.hbm %s1356_s3, 4096 }
  0x37   :  { %p1114_p10 = scmp.ne.s32.totalorder %s1356_s3, %s1113_s12  ;;  %p1117_p11 = scmp.lt.u32.totalorder %s1113_s12, %s1356_s3 }
  0x39   :  { %p1119_p12 = pnand %p1117_p11, %p1114_p10 }
  0x3b   :  { %1122 = shalt.err (!%p1119_p12)
}
  0x3c   :  { %s1123_s21 = scalar_lea.vmem %s1280_s18, 4096  ;;  %p1128_p0 = scmp.lt.s32.totalorder %s1280_s18, %s1280_s18 }
  0x3d   :  { %p1124_p13 = scmp.ne.s32.totalorder %s1280_s18, %s1123_s21  ;;  %p1129_p1 = scmp.lt.s32.totalorder %s1123_s21, %s1123_s21 }
  0x3f   :  { %p1130_p2 = por %p1129_p1, %p1128_p0 }
  0x41   :  { %p1131_p3 = pnand %p1130_p2, %p1124_p13 }
  0x43   :  { %1134 = shalt.err (!%p1131_p3)
}
  0x44   :  { %53 = dma.hbm_to_vmem [thread:$0]  %s1356_s3, 4096, %s1280_s18, [#allocation6], %s1188_s19, %s1188_s19, %s1189_s20  }
  0x45   :  { %s1195_s22 = smov [#allocation10]   ;;  %s1135_s27 = scalar_lea.hbm %s1360_s7, 1024 }
  0x46   :  { %s75_s23 = sshll.u32 %s1195_s22, 4  ;;  %p1136_p4 = scmp.ne.s32.totalorder %s1360_s7, %s1135_s27  ;;  %s76_s23 = int_to_ptr.vmem [resolvable:$true] %s75_s23 }
  0x47   :  { %p1139_p5 = scmp.lt.u32.totalorder %s1135_s27, %s1360_s7 }
  0x49   :  { %p1141_p6 = pnand %p1139_p5, %p1136_p4 }
  0x4b   :  { %1144 = shalt.err (!%p1141_p6)
}
  0x4c   :  { %s1145_s30 = scalar_lea.vmem %s76_s23, 1024  ;;  %p1150_p8 = scmp.lt.s32.totalorder %s76_s23, %s76_s23 }
  0x4d   :  { %p1146_p7 = scmp.ne.s32.totalorder %s76_s23, %s1145_s30  ;;  %p1151_p9 = scmp.lt.s32.totalorder %s1145_s30, %s1145_s30 }
  0x4f   :  { %p1152_p10 = por %p1151_p9, %p1150_p8 }
  0x51   :  { %p1153_p11 = pnand %p1152_p10, %p1146_p7 }
  0x53   :  { %1156 = shalt.err (!%p1153_p11)
}
  0x54   :  { %81 = dma.hbm_to_vmem [thread:$0]  %s1360_s7, 1024, %s76_s23, [#allocation9], %s1191_s1, %s1191_s1, %s1192_s10  }
  0x55   :  { %1179 = dma.done.wait [#allocation3], 64  }
  0x56   :  { %1180 = vsyncadd [#allocation3], 4294967232 }
  0x57   :  { %1181 = dma.done.wait [#allocation6], 6144  }
  0x58   :  { %1182 = vsyncadd [#allocation6], 4294961152 }
  0x59   :  { %1183 = dma.done.wait [#allocation9], 3072  }
  0x5a   :  { %1184 = vsyncadd [#allocation9], 4294964224  ;;  %v1196_v0 = vmov 0   ;;  %v949_v1 = vld [vmem:[#allocation5 + $0x4] ss:$8 sps:$4 sm:$0xff]   ;;  %v1025_v54 = vld [vmem:[#allocation8 + $0x50] sm:$0xff]   ;;  %v119_v62 = vlaneseq }
  0x5b   :  { %241 = vmatprep.mubr.bf16.mxu0 %v1196_v0  ;;  %v951_v2 = vld [vmem:[#allocation5] ss:$8 sps:$4 sm:$0xff]   ;;  %209 = vmatprep.subr.bf16.mxu0 %v949_v1  ;;  %v952_v3 = vld [vmem:[#allocation5 + $0x14] ss:$8 sps:$4 sm:$0xff]   ;;  %v954_v4 = vld [vmem:[#allocation5 + $0x10] ss:$8 sps:$4 sm:$0xff]  }
  0x5c   :  { %210 = vmatpush1.bf16.msra.mxu0 %v951_v2  ;;  %v955_v5 = vld [vmem:[#allocation5 + $0x24] ss:$8 sps:$4 sm:$0xff]   ;;  %v957_v6 = vld [vmem:[#allocation5 + $0x20] ss:$8 sps:$4 sm:$0xff]   ;;  %v958_v7 = vld [vmem:[#allocation5 + $0x34] ss:$8 sps:$4 sm:$0xff]  }
  0x5d   :  { %211 = vmatprep.subr.bf16.mxu0 %v952_v3  ;;  %v960_v8 = vld [vmem:[#allocation5 + $0x30] ss:$8 sps:$4 sm:$0xff]   ;;  %v961_v9 = vld [vmem:[#allocation5 + $0x44] ss:$8 sps:$4 sm:$0xff]   ;;  %v975_v11 = vld [vmem:[#allocation7] ss:$8 sps:$4 sm:$0xff]  }
  0x5e   :  { %v973_v10 = vld [vmem:[#allocation7 + $0x4] ss:$8 sps:$4 sm:$0xff]   ;;  %v976_v12 = vld [vmem:[#allocation7 + $0x14] ss:$8 sps:$4 sm:$0xff]   ;;  %v963_v13 = vld [vmem:[#allocation5 + $0x40] ss:$8 sps:$4 sm:$0xff]  }
  0x5f   :  { %458 = vmatprep.subr.bf16.mxu1 %v973_v10  ;;  %v978_v14 = vld [vmem:[#allocation7 + $0x10] ss:$8 sps:$4 sm:$0xff]   ;;  %v979_v15 = vld [vmem:[#allocation7 + $0x24] ss:$8 sps:$4 sm:$0xff]   ;;  %v964_v16 = vld [vmem:[#allocation5 + $0x54] ss:$8 sps:$4 sm:$0xff]  }
  0x60   :  { %212 = vmatpush1.bf16.msra.mxu0 %v954_v4  ;;  %459 = vmatpush1.bf16.msra.mxu1 %v975_v11  ;;  %v966_v17 = vld [vmem:[#allocation5 + $0x50] ss:$8 sps:$4 sm:$0xff]   ;;  %v981_v18 = vld [vmem:[#allocation7 + $0x20] ss:$8 sps:$4 sm:$0xff]   ;;  %v982_v19 = vld [vmem:[#allocation7 + $0x34] ss:$8 sps:$4 sm:$0xff]  }
  0x61   :  { %213 = vmatprep.subr.bf16.mxu0 %v955_v5  ;;  %460 = vmatprep.subr.bf16.mxu1 %v976_v12  ;;  %v967_v20 = vld [vmem:[#allocation5 + $0x64] ss:$8 sps:$4 sm:$0xff]   ;;  %v969_v21 = vld [vmem:[#allocation5 + $0x60] ss:$8 sps:$4 sm:$0xff]   ;;  %v984_v22 = vld [vmem:[#allocation7 + $0x30] ss:$8 sps:$4 sm:$0xff]  }
  0x62   :  { %v985_v23 = vld [vmem:[#allocation7 + $0x44] ss:$8 sps:$4 sm:$0xff]   ;;  %v970_v24 = vld [vmem:[#allocation5 + $0x74] ss:$8 sps:$4 sm:$0xff]   ;;  %v972_v25 = vld [vmem:[#allocation5 + $0x70] ss:$8 sps:$4 sm:$0xff]  }
  0x63   :  { %v987_v26 = vld [vmem:[#allocation7 + $0x40] ss:$8 sps:$4 sm:$0xff]   ;;  %v988_v27 = vld [vmem:[#allocation7 + $0x54] ss:$8 sps:$4 sm:$0xff]   ;;  %v990_v29 = vld [vmem:[#allocation7 + $0x50] ss:$8 sps:$4 sm:$0xff]  }
  0x64   :  { %214 = vmatpush1.bf16.msra.mxu0 %v957_v6  ;;  %461 = vmatpush1.bf16.msra.mxu1 %v978_v14  ;;  %v100_v28 = vld [vmem:[#allocation2] sm:$0xf]  ;;  %v991_v30 = vld [vmem:[#allocation7 + $0x64] ss:$8 sps:$4 sm:$0xff]   ;;  %v993_v31 = vld [vmem:[#allocation7 + $0x60] ss:$8 sps:$4 sm:$0xff]  }
  0x65   :  { %215 = vmatprep.subr.bf16.mxu0 %v958_v7  ;;  %462 = vmatprep.subr.bf16.mxu1 %v979_v15  ;;  %v994_v32 = vld [vmem:[#allocation7 + $0x74] ss:$8 sps:$4 sm:$0xff]   ;;  %v996_v33 = vld [vmem:[#allocation7 + $0x70] ss:$8 sps:$4 sm:$0xff]   ;;  %v997_v34 = vld [vmem:[#allocation7 + $0x84] ss:$8 sps:$4 sm:$0xff]  }
  0x66   :  { %v999_v35 = vld [vmem:[#allocation7 + $0x80] ss:$8 sps:$4 sm:$0xff]   ;;  %v1000_v36 = vld [vmem:[#allocation7 + $0x94] ss:$8 sps:$4 sm:$0xff]   ;;  %v1002_v37 = vld [vmem:[#allocation7 + $0x90] ss:$8 sps:$4 sm:$0xff]  }
  0x67   :  { %v1003_v38 = vld [vmem:[#allocation7 + $0xa4] ss:$8 sps:$4 sm:$0xff]   ;;  %v1005_v39 = vld [vmem:[#allocation7 + $0xa0] ss:$8 sps:$4 sm:$0xff]   ;;  %v1006_v40 = vld [vmem:[#allocation7 + $0xb4] ss:$8 sps:$4 sm:$0xff]  }
  0x68   :  { %216 = vmatpush1.bf16.msra.mxu0 %v960_v8  ;;  %463 = vmatpush1.bf16.msra.mxu1 %v981_v18  ;;  %v1008_v41 = vld [vmem:[#allocation7 + $0xb0] ss:$8 sps:$4 sm:$0xff]   ;;  %v1009_v42 = vld [vmem:[#allocation7 + $0xc4] ss:$8 sps:$4 sm:$0xff]   ;;  %v1011_v43 = vld [vmem:[#allocation7 + $0xc0] ss:$8 sps:$4 sm:$0xff]  }
  0x69   :  { %217 = vmatprep.subr.bf16.mxu0 %v961_v9  ;;  %464 = vmatprep.subr.bf16.mxu1 %v982_v19  ;;  %v1012_v44 = vld [vmem:[#allocation7 + $0xd4] ss:$8 sps:$4 sm:$0xff]   ;;  %v1014_v45 = vld [vmem:[#allocation7 + $0xd0] ss:$8 sps:$4 sm:$0xff]   ;;  %v1015_v46 = vld [vmem:[#allocation7 + $0xe4] ss:$8 sps:$4 sm:$0xff]  }
  0x6a   :  { %v1017_v47 = vld [vmem:[#allocation7 + $0xe0] ss:$8 sps:$4 sm:$0xff]   ;;  %v1018_v48 = vld [vmem:[#allocation7 + $0xf4] ss:$8 sps:$4 sm:$0xff]   ;;  %v1020_v49 = vld [vmem:[#allocation7 + $0xf0] ss:$8 sps:$4 sm:$0xff]  }
  0x6b   :  { %v1021_v50 = vld [vmem:[#allocation8 + $0x40] sm:$0xff]   ;;  %v1023_v52 = vld [vmem:[#allocation8 + $0x48] sm:$0xff]   ;;  %v1026_v55 = vld [vmem:[#allocation8 + $0x10] sm:$0xff]   ;;  %v120_v63 = vshrl.u32 %v119_v62, 7  ;;  %v1197_v19 = vmov 0.0   ;;  %vm1198_vm0 = vmmov 0  }
  0x6c   :  { %218 = vmatpush1.bf16.msra.mxu0 %v963_v13  ;;  %465 = vmatpush1.bf16.msra.mxu1 %v984_v22  ;;  %v1022_v51 = vld [vmem:[#allocation8] sm:$0xff]   ;;  %v1024_v53 = vld [vmem:[#allocation8 + $0x8] sm:$0xff]   ;;  %v1027_v56 = vld [vmem:[#allocation8 + $0x58] sm:$0xff]   ;;  %s1199_s12 = smov [#allocation11]  }
  0x6d   :  { %219 = vmatprep.subr.bf16.mxu0 %v964_v16  ;;  %466 = vmatprep.subr.bf16.mxu1 %v985_v23  ;;  %v1028_v57 = vld [vmem:[#allocation8 + $0x18] sm:$0xff]   ;;  %v1029_v58 = vld [vmem:[#allocation8 + $0x60] sm:$0xff]   ;;  %v1031_v60 = vld [vmem:[#allocation8 + $0x68] sm:$0xff]   ;;  %v121_v0 = vsub.s32 0, %v120_v63  ;;  %v125_v2 = vsub.s32 1, %v120_v63 }
  0x6e   :  { %v1030_v59 = vld [vmem:[#allocation8 + $0x20] sm:$0xff]   ;;  %v1032_v61 = vld [vmem:[#allocation8 + $0x28] sm:$0xff]   ;;  %v117_v1 = vld [vmem:[%s1355_s2] sm:$0x3] }
  0x6f   :  { %v122_v3 = vrot.slane %v117_v1, %v121_v0  ;;  %v126_v4 = vrot.slane %v117_v1, %v125_v2  ;;  %v1033_v15 = vld [vmem:[#allocation8 + $0x70] sm:$0xff]   ;;  %v1036_v18 = vld [vmem:[#allocation8 + $0x38] sm:$0xff]  }
  0x70   :  { %220 = vmatpush1.bf16.msra.mxu0 %v966_v17  ;;  %467 = vmatpush1.bf16.msra.mxu1 %v987_v26  ;;  %v1034_v16 = vld [vmem:[#allocation8 + $0x30] sm:$0xff]   ;;  %v1035_v17 = vld [vmem:[#allocation8 + $0x78] sm:$0xff]  }
  0x71   :  { %221 = vmatprep.subr.bf16.mxu0 %v967_v20  ;;  %468 = vmatprep.subr.bf16.mxu1 %v988_v27  ;;  %v286_v20 = vld [vmem:[%s1357_s4] sm:$0x3] }
  0x72   :  { %v295_v22 = vrot.slane %v286_v20, %v125_v2 }
  0x74   :  { %222 = vmatpush1.bf16.msra.mxu0 %v969_v21  ;;  %469 = vmatpush1.bf16.msra.mxu1 %v990_v29  ;;  %v291_v21 = vrot.slane %v286_v20, %v121_v0 }
  0x75   :  { %223 = vmatprep.subr.bf16.mxu0 %v970_v24  ;;  %470 = vmatprep.subr.bf16.mxu1 %v991_v30 }
  0x78   :  { %224 = vmatpush1.bf16.msra.mxu0 %v972_v25  ;;  %471 = vmatpush1.bf16.msra.mxu1 %v993_v31 }
  0x79   :  { %472 = vmatprep.subr.bf16.mxu1 %v994_v32  ;;  %885 = vmatprep.subr.bf16.mxu0 %v1021_v50  ;;  %v1037_v32 = vld [vmem:[#allocation10] sm:$0xff]   ;;  %v876_v50 = vld [vmem:[%s1361_s8] ss:$0 sm:$0xff] }
  0x7b   :  { %242 = vmatmul.mubr.bf16.vlgmr.msra.gmra.mrb[0].mxu0 %v100_v28 }
  0x7c   :  { %473 = vmatpush1.bf16.msra.mxu1 %v996_v33  ;;  %886 = vmatpush3.bf16.msra.mxu0 %v1022_v51 }
  0x7d   :  { %474 = vmatprep.subr.bf16.mxu1 %v997_v34  ;;  %887 = vmatprep.subr.bf16.mxu0 %v1023_v52  ;;  %v1038_v34 = vld [vmem:[#allocation10 + $0x8] sm:$0xff]  }
  0x80   :  { %475 = vmatpush1.bf16.msra.mxu1 %v999_v35  ;;  %888 = vmatpush3.bf16.msra.mxu0 %v1024_v53  ;;  %v1039_v35 = vld [vmem:[#allocation10 + $0x10] sm:$0xff]  }
  0x81   :  { %476 = vmatprep.subr.bf16.mxu1 %v1000_v36  ;;  %889 = vmatprep.subr.bf16.mxu0 %v1025_v54  ;;  %v1040_v36 = vld [vmem:[#allocation10 + $0x18] sm:$0xff]  }
  0x84   :  { %477 = vmatpush1.bf16.msra.mxu1 %v1002_v37  ;;  %890 = vmatpush3.bf16.msra.mxu0 %v1026_v55  ;;  %v1041_v37 = vld [vmem:[#allocation10 + $0x20] sm:$0xff]  }
  0x85   :  { %478 = vmatprep.subr.bf16.mxu1 %v1003_v38  ;;  %891 = vmatprep.subr.bf16.mxu0 %v1027_v56  ;;  %v1042_v38 = vld [vmem:[#allocation10 + $0x28] sm:$0xff]  }
  0x88   :  { %479 = vmatpush1.bf16.msra.mxu1 %v1005_v39  ;;  %892 = vmatpush3.bf16.msra.mxu0 %v1028_v57  ;;  %v1043_v39 = vld [vmem:[#allocation10 + $0x30] sm:$0xff]  }
  0x89   :  { %480 = vmatprep.subr.bf16.mxu1 %v1006_v40  ;;  %893 = vmatprep.subr.bf16.mxu0 %v1029_v58  ;;  %v1044_v40 = vld [vmem:[#allocation10 + $0x38] sm:$0xff]  }
  0x8c   :  { %481 = vmatpush1.bf16.msra.mxu1 %v1008_v41  ;;  %894 = vmatpush3.bf16.msra.mxu0 %v1030_v59 }
  0x8d   :  { %482 = vmatprep.subr.bf16.mxu1 %v1009_v42  ;;  %895 = vmatprep.subr.bf16.mxu0 %v1031_v60  ;;  %v859_v42 = vld [vmem:[%s1359_s6] ss:$0 sm:$0xff]  ;;  %s800_s6 = sshll.u32 %s1199_s12, 4  ;;  %s801_s6 = int_to_ptr.vmem [resolvable:$true] %s800_s6 }
  0x8e   :  { %s1157_s13 = scalar_lea.vmem %s801_s6, 128  ;;  %p1162_p13 = scmp.lt.s32.totalorder %s801_s6, %s801_s6 }
  0x8f   :  { %p1158_p12 = scmp.ne.s32.totalorder %s801_s6, %s1157_s13  ;;  %p1163_p0 = scmp.lt.s32.totalorder %s1157_s13, %s1157_s13 }
  0x90   :  { %483 = vmatpush1.bf16.msra.mxu1 %v1011_v43  ;;  %896 = vmatpush3.bf16.msra.mxu0 %v1032_v61 }
  0x91   :  { %484 = vmatprep.subr.bf16.mxu1 %v1012_v44  ;;  %897 = vmatprep.subr.bf16.mxu0 %v1033_v15  ;;  %p1164_p1 = por %p1163_p0, %p1162_p13 }
  0x93   :  { %p1165_p2 = pnand %p1164_p1, %p1158_p12 }
  0x94   :  { %485 = vmatpush1.bf16.msra.mxu1 %v1014_v45  ;;  %898 = vmatpush3.bf16.msra.mxu0 %v1034_v16 }
  0x95   :  { %486 = vmatprep.subr.bf16.mxu1 %v1015_v46  ;;  %899 = vmatprep.subr.bf16.mxu0 %v1035_v17 }
  0x98   :  { %487 = vmatpush1.bf16.msra.mxu1 %v1017_v47  ;;  %900 = vmatpush3.bf16.msra.mxu0 %v1036_v18 }
  0x99   :  { %488 = vmatprep.subr.bf16.mxu1 %v1018_v48  ;;  %916 = vmatprep.subr.bf16.mxu0 %v1197_v19 }
  0x9c   :  { %489 = vmatpush1.bf16.msra.mxu1 %v1020_v49 }
 0x14e   :  { %v243_v5 = vpop.f32.mrb[0].mxu0 }
 0x14f   :  { %v244_v6 = vadd.f32 %v243_v5, %v122_v3  ;;  %v245_v7 = vpop.f32.mrb[1].mxu0 }
 0x150   :  { %v246_v8 = vadd.f32 %v245_v7, %v126_v4  ;;  %v247_v9 = vpop.f32.mrb[2].mxu0 }
 0x151   :  { %v250_v10 = vmax.f32 %v244_v6, 0.0  ;;  %v248_v11 = vpop.f32.mrb[3].mxu0 }
 0x152   :  { %v251_v12 = vmax.f32 %v246_v8, 0.0 }
 0x153   :  { %v252_v14 = vpack.c.bf16 %v250_v10, %v250_v10 }
 0x154   :  { %v253_v13 = vpack.c.bf16 %v251_v12, %v251_v12 }
 0x156   :  { %490 = vmatprep.mubr.bf16.mxu1 %v253_v13 }
 0x157   :  { %491 = vmatmul.mubr.bf16.vlgmr.msra.gmra.mrb[0].mxu1 %v252_v14 }
 0x22a   :  { %v492_v23 = vpop.f32.mrb[0].mxu1 }
 0x22b   :  { %v493_v24 = vadd.f32 %v492_v23, %v291_v21  ;;  %v494_v25 = vpop.f32.mrb[1].mxu1 }
 0x22c   :  { %v495_v26 = vadd.f32 %v494_v25, %v295_v22  ;;  %v496_v27 = vpop.f32.mrb[2].mxu1 }
 0x22d   :  { %v499_v28 = vmax.f32 %v493_v24, 0.0  ;;  %v497_v29 = vpop.f32.mrb[3].mxu1 }
 0x22e   :  { %v500_v30 = vmax.f32 %v495_v26, 0.0 }
 0x22f   :  { %v501_v33 = vpack.c.bf16 %v499_v28, %v499_v28 }
 0x230   :  { %v502_v31 = vpack.c.bf16 %v500_v30, %v500_v30 }
 0x232   :  { %670 = vmatprep.mubr.bf16.mxu0 %v502_v31 }
 0x233   :  { %671 = vmatmul.mubr.bf16.vlgmr.msra.gmra.mrb[4].mxu0 %v501_v33 }
 0x234   :  { %917 = vmatpush3.bf16.msra.mxu0 %v1037_v32  ;;  %932 = vmatprep.mubr.msk.bf16.mxu0 %vm1198_vm0, %v1197_v19 }
 0x235   :  { %918 = vmatprep.subr.bf16.mxu0 %v1197_v19 }
 0x238   :  { %919 = vmatpush3.bf16.msra.mxu0 %v1038_v34 }
 0x239   :  { %920 = vmatprep.subr.bf16.mxu0 %v1197_v19 }
 0x23c   :  { %921 = vmatpush3.bf16.msra.mxu0 %v1039_v35 }
 0x23d   :  { %922 = vmatprep.subr.bf16.mxu0 %v1197_v19 }
 0x240   :  { %923 = vmatpush3.bf16.msra.mxu0 %v1040_v36 }
 0x241   :  { %924 = vmatprep.subr.bf16.mxu0 %v1197_v19 }
 0x244   :  { %925 = vmatpush3.bf16.msra.mxu0 %v1041_v37 }
 0x245   :  { %926 = vmatprep.subr.bf16.mxu0 %v1197_v19 }
 0x248   :  { %927 = vmatpush3.bf16.msra.mxu0 %v1042_v38 }
 0x249   :  { %928 = vmatprep.subr.bf16.mxu0 %v1197_v19 }
 0x24c   :  { %929 = vmatpush3.bf16.msra.mxu0 %v1043_v39 }
 0x24d   :  { %930 = vmatprep.subr.bf16.mxu0 %v1197_v19 }
 0x250   :  { %931 = vmatpush3.bf16.msra.mxu0 %v1044_v40 }
 0x306   :  { %v901_v41 = vpop.f32.mrb[4].mxu0 }
 0x307   :  { %v902_v43 = vpop.f32.mrb[5].mxu0 }
 0x308   :  { %v903_v44 = vadd.f32 %v902_v43, %v901_v41  ;;  %v904_v45 = vpop.f32.mrb[6].mxu0 }
 0x309   :  { %v905_v46 = vpop.f32.mrb[7].mxu0 }
 0x30a   :  { %v673_v47 = vadd.f32 %v903_v44, %v859_v42 }
 0x30c   :  { %v678_v48 = vmax.f32 %v673_v47, 0.0 }
 0x30e   :  { %v679_v49 = vpack.c.bf16 %v678_v48, %v678_v48 }
 0x310   :  { %933 = vmatmul.mubr.bf16.vlgmr.msra.gmra.mrb[8].mxu0 %v679_v49 }
 0x3e3   :  { %v785_v51 = vpop.f32.mrb[8].mxu0 }
 0x3e4   :  { %v786_v52 = vadd.f32 %v876_v50, %v785_v51  ;;  %v934_v53 = vpop.f32.mrb[9].mxu0 }
 0x3e5   :  { %v788_v54 = vpop.f32.mrb[10].mxu0 }
 0x3e6   :  { %1045 = vtanh.f32 %v786_v52  ;;  %v935_v55 = vpop.f32.mrb[11].mxu0 }
 0x3f0   :  { %v1046_v56 = vpop.eup %1045 }
 0x3f1   :  { %v792_v57 = vmul.f32 0.397, %v1046_v56 }
 0x3f3   :  { %793 = vst [vmem:[#allocation11] sm:$0xff] %v792_v57 }
 0x3f4   :  { %1168 = shalt.err (!%p1165_p2)
}
 0x3f5   :  { %s1169_s15 = scalar_lea.hbm %s1362_s9, 128 }
 0x3f6   :  { %p1170_p3 = scmp.ne.s32.totalorder %s1362_s9, %s1169_s15  ;;  %p1173_p4 = scmp.lt.u32.totalorder %s1169_s15, %s1362_s9 }
 0x3f8   :  { %p1175_p5 = pnand %p1173_p4, %p1170_p3 }
 0x3fa   :  { %1178 = shalt.err (!%p1175_p5)
}
 0x3fb   :  { %803 = dma.vmem_to_hbm [thread:$0]  %s801_s6, 128, %s1362_s9, [#allocation4]  }
 0x3fc   :  { %1185 = dma.done.wait [#allocation4], 128  }
 0x3fd   :  { %1186 = vsyncadd [#allocation4], 4294967168 }
 0x3fe   :  { %807 = vsyncpa [#allocation3], 1 }
 0x3ff   :  { %808 = vsyncpa [#allocation6], 1 }
 0x400   :  { %809 = vsyncpa [#allocation9], 1 }
 0x401   :  { %810 = vsyncpa [#allocation4], 1 }

</bundles_post_ra>
